<compile_context>
chip_gen: v7x
topology: tpu7x:2x2x1
jax: 0.10.0
libtpu: 0.0.40
codegen_flags: <defaults>
</compile_context>

<pallas_src>
import jax
import jax.numpy as jnp
from jax.experimental import pallas as pl
from jax.experimental.pallas import tpu as pltpu


def _round_up(x, m):
    return ((x + m - 1) // m) * m


def _vmem_capacity_bytes():
    try:
        return int(pltpu.get_tpu_info().vmem_capacity_bytes)
    except Exception:
        return 64 << 20  # conservative default (v7x per-core VMEM)


def _wn_linear_kernel(s_ref, x_ref, v_ref, b_ref, out_ref, acc_ref):
    k = pl.program_id(2)

    @pl.when(k == 0)
    def _init():
        acc_ref[...] = jnp.zeros_like(acc_ref)

    # Single MXU matmul per tile in the operands' native dtype, f32 accumulation.
    acc_ref[...] += jnp.dot(x_ref[...], v_ref[...],
                            preferred_element_type=jnp.float32)

    @pl.when(k == pl.num_programs(2) - 1)
    def _finalize():
        # weight_norm(dim=None):  x @ (g * V / ||V||_F) == (x @ V) * (g / ||V||_F)
        scale = s_ref[0]  # scalar from SMEM (scalar-prefetch operand)
        out_ref[...] = (acc_ref[...] * scale
                        + b_ref[...].astype(jnp.float32)).astype(out_ref.dtype)


def linear_transform(x, v, g, b, *, scale=None):
    """Weight-normalized linear layer:  y = x @ (g * V / ||V||_F) + b.

    x : (B, in_dim)
    v : (in_dim, out_dim)   (pre-transposed nn.Linear weight_v)
    g : scalar              (weight_norm weight_g, dim=None)
    b : (out_dim,) or (1, out_dim)
    scale : optional precomputed f32 scalar g/||V||_F.  Pass it when weights
            are static to avoid re-reading V from HBM for the norm each call.
    returns: (B, out_dim)
    """
    B, in_dim = x.shape
    kv, out_dim = v.shape
    assert kv == in_dim, "v must be (in_dim, out_dim)"
    b = jnp.reshape(b, (1, out_dim))

    # g / ||V||_F : the one full-weight reduction that defines weight_norm(dim=None).
    # Computed from the original (unpadded) V; callers should cache it when static.
    if scale is None:
        scale = (jnp.asarray(g, jnp.float32)
                 / jnp.sqrt(jnp.sum(jnp.square(v.astype(jnp.float32)))))
    scale = jnp.asarray(scale, jnp.float32).reshape(1)

    x_it = x.dtype.itemsize
    v_it = v.dtype.itemsize
    o_it = x.dtype.itemsize

    vmem_cap = _vmem_capacity_bytes()
    budget = min(vmem_cap // 2, 48 << 20)           # tile-buffer budget with headroom
    v_bufs = 3 if vmem_cap >= (100 << 20) else 2    # deeper weight pipeline on v5e/v6e

    # ---- batch tiling: dtype-aware sublane rounding, cdiv grid (no full-tile pad)
    sub = max(8, 32 // x_it)                         # 8 f32 / 16 bf16 / 32 int8-fp8
    tb = min(128, _round_up(B, sub))
    Bp = _round_up(B, sub)
    if Bp != B:
        x = jnp.pad(x, ((0, Bp - B), (0, 0)))

    # ---- K tiling: full K when modest, else 512-wide chunks (zero-pad ragged K)
    if in_dim <= 2048:
        tk, Kp = in_dim, in_dim
    else:
        tk = 512
        Kp = _round_up(in_dim, tk)
        if Kp != in_dim:
            x = jnp.pad(x, ((0, 0), (0, Kp - in_dim)))
            v = jnp.pad(v, ((0, Kp - in_dim), (0, 0)))

    # ---- N tiling from the VMEM budget (never a full-out_dim slab for big layers)
    if out_dim <= 128:
        tile_n = out_dim
    else:
        fixed = 2 * tb * tk * x_it                   # double-buffered x tile
        per_n = (v_bufs * tk * v_it                  # weight tile buffers
                 + 2 * tb * o_it                     # double-buffered out tile
                 + tb * 4)                           # f32 accumulator column
        tile_n = max(128, ((budget - fixed) // max(per_n, 1)) // 128 * 128)
        tile_n = min(tile_n, 4096, _round_up(out_dim, 128))

    grid_n = pl.cdiv(out_dim, tile_n)
    grid_b = pl.cdiv(Bp, tb)
    grid_k = pl.cdiv(Kp, tk)
    # N outermost (weight streamed once / megacore-sharded on v7x),
    # batch middle, K innermost reduction.
    grid = (grid_n, grid_b, grid_k)

    est_vmem = (2 * tb * tk * x_it
                + v_bufs * tk * tile_n * v_it
                + 2 * tb * tile_n * o_it
                + tb * tile_n * 4
                + 2 * 8 * tile_n * b.dtype.itemsize)
    vmem_limit = int(min(vmem_cap * 9 // 10, max(32 << 20, 2 * est_vmem)))

    def _v_spec():
        if v_bufs > 2:
            try:
                return pl.BlockSpec((tk, tile_n), lambda j, i, k, s: (k, j),
                                    pipeline_mode=pl.Buffered(v_bufs))
            except Exception:
                pass
        return pl.BlockSpec((tk, tile_n), lambda j, i, k, s: (k, j))

    # Actual HBM traffic under this grid order: x re-streamed once per N tile,
    # V re-read per batch tile only when K is tiled, bias/out read/written once.
    v_passes = grid_b if grid_k > 1 else 1
    cost = pl.CostEstimate(
        flops=2 * Bp * Kp * out_dim,
        transcendentals=0,
        bytes_accessed=int(Bp * Kp * x_it * grid_n
                           + Kp * out_dim * v_it * v_passes
                           + out_dim * b.dtype.itemsize
                           + Bp * out_dim * o_it),
    )

    out = pl.pallas_call(
        _wn_linear_kernel,
        out_shape=jax.ShapeDtypeStruct((Bp, out_dim), x.dtype),
        grid_spec=pltpu.PrefetchScalarGridSpec(
            num_scalar_prefetch=1,                                # scale -> SMEM
            grid=grid,
            in_specs=[
                pl.BlockSpec((tb, tk), lambda j, i, k, s: (i, k)),      # x rows
                _v_spec(),                                              # V slab
                pl.BlockSpec((1, tile_n), lambda j, i, k, s: (0, j)),   # bias
            ],
            out_specs=pl.BlockSpec((tb, tile_n), lambda j, i, k, s: (i, j)),
            scratch_shapes=[pltpu.VMEM((tb, tile_n), jnp.float32)],
        ),
        compiler_params=pltpu.CompilerParams(
            dimension_semantics=("parallel", "parallel", "arbitrary"),
            vmem_limit_bytes=vmem_limit),
        cost_estimate=cost,
    )(scale, x, v, b)

    return out[:B] if Bp != B else out


def init_params(key, in_dim, out_dim, dtype=jnp.float32):
    """Matches PyTorch weight_norm(nn.Linear) init: g = ||V||_F, so W == V."""
    k_v, k_b = jax.random.split(key, 2)
    bound = 1.0 / (in_dim ** 0.5)
    v = jax.random.uniform(k_v, (in_dim, out_dim), dtype, -bound, bound)
    b = jax.random.uniform(k_b, (1, out_dim), dtype, -bound, bound)
    g = jnp.sqrt(jnp.sum(jnp.square(v.astype(jnp.float32)))).astype(dtype)
    return {"v": v, "g": g, "b": b}


def _reference(x, v, g, b):
    w = (jnp.asarray(g, jnp.float32) * v.astype(jnp.float32)
         / jnp.sqrt(jnp.sum(jnp.square(v.astype(jnp.float32)))))
    return (x.astype(jnp.float32) @ w
            + jnp.reshape(b, (1, -1)).astype(jnp.float32)).astype(x.dtype)


if __name__ == "__main__":
    key = jax.random.PRNGKey(0)

    def run_case(B, in_dim, out_dim, dtype, atol, rtol):
        ck = jax.random.fold_in(key, B * 1_000_003 + in_dim * 1_003 + out_dim)
        kx, kp = jax.random.split(ck)
        x = jax.random.normal(kx, (B, in_dim), jnp.float32).astype(dtype)
        params = init_params(kp, in_dim, out_dim, dtype)
        out = jax.block_until_ready(
            linear_transform(x, params["v"], params["g"], params["b"]))
        ref = _reference(x, params["v"], params["g"], params["b"])
        assert out.shape == (B, out_dim), (out.shape, (B, out_dim))
        assert jnp.allclose(out.astype(jnp.float32), ref.astype(jnp.float32),
                            atol=atol, rtol=rtol), \
            f"mismatch for case B={B}, in={in_dim}, out={out_dim}, dtype={dtype}"

    # Small lane-aligned case (typical fusion-MLP shape).
    run_case(16, 96, 128, jnp.float32, atol=1e-4, rtol=1e-3)
    # Ragged batch crossing a batch-tile boundary (cdiv grid + masked edge block).
    run_case(130, 96, 128, jnp.float32, atol=1e-4, rtol=1e-3)
    # K-tiled path: in_dim > 2048 and not a multiple of the K tile (zero-padded K).
    run_case(8, 2500, 256, jnp.float32, atol=5e-3, rtol=2e-2)
    # bf16 path (dtype-aware sublane rounding, out_dim < 128).
    run_case(20, 96, 64, jnp.bfloat16, atol=5e-2, rtol=2e-2)

    print("KERNEL_OK")
</pallas_src>

<mosaic_0001>
module attributes {stable_mosaic.version = 11 : i64} {
  func.func @_wn_linear_kernel(%arg0: i32, %arg1: i32, %arg2: i32, %arg3: memref<1xf32, #tpu.memory_space<smem>>, %arg4: memref<16x96xf32, #tpu.memory_space<vmem>>, %arg5: memref<96x128xf32, #tpu.memory_space<vmem>>, %arg6: memref<1x128xf32, #tpu.memory_space<vmem>>, %arg7: memref<16x128xf32, #tpu.memory_space<vmem>>, %arg8: memref<16x128xf32, #tpu.memory_space<vmem>>) attributes {dimension_semantics = [#tpu.dimension_semantics<parallel>, #tpu.dimension_semantics<parallel>, #tpu.dimension_semantics<arbitrary>], iteration_bounds = array<i64: 1, 1, 1>, scalar_prefetch = 1 : i64, scratch_operands = 1 : i64, tpu.core_type = #tpu.core_type<tc>, window_params = [{transform_indices = @transform_0, window_bounds = array<i64: 16, 96>}, {transform_indices = @transform_1, window_bounds = array<i64: 96, 128>}, {transform_indices = @transform_2, window_bounds = array<i64: 1, 128>}, {transform_indices = @transform_3, window_bounds = array<i64: 16, 128>}]} {
    %c0_i32 = arith.constant 0 : i32
    %0 = arith.cmpi eq, %arg2, %c0_i32 : i32
    %1 = arith.extui %0 : i1 to i32
    %c0_i32_0 = arith.constant 0 : i32
    %2 = arith.cmpi ne, %1, %c0_i32_0 : i32
    scf.if %2 {
      %cst_10 = arith.constant 0.000000e+00 : f32
      %12 = vector.broadcast %cst_10 : f32 to vector<16x128xf32>
      %c0_11 = arith.constant 0 : index
      %c0_12 = arith.constant 0 : index
      %13 = vector.load %arg8[%c0_11, %c0_12] : memref<16x128xf32, #tpu.memory_space<vmem>>, vector<16x128xf32>
      tpu.vector_store %arg8[%c0_11, %c0_12], %12 {strides = array<i32>} : memref<16x128xf32, #tpu.memory_space<vmem>>, vector<16x128xf32>,
    } else {
    }
    %c0 = arith.constant 0 : index
    %c0_1 = arith.constant 0 : index
    %3 = vector.load %arg8[%c0, %c0_1] : memref<16x128xf32, #tpu.memory_space<vmem>>, vector<16x128xf32>
    %c0_2 = arith.constant 0 : index
    %c0_3 = arith.constant 0 : index
    %4 = vector.load %arg4[%c0_2, %c0_3] : memref<16x96xf32, #tpu.memory_space<vmem>>, vector<16x96xf32>
    %c0_4 = arith.constant 0 : index
    %c0_5 = arith.constant 0 : index
    %5 = vector.load %arg5[%c0_4, %c0_5] : memref<96x128xf32, #tpu.memory_space<vmem>>, vector<96x128xf32>
    %cst = arith.constant dense<0.000000e+00> : vector<16x128xf32>
    %6 = tpu.matmul %4, %5, %cst {dimension_numbers = #tpu.dot_dimension_numbers<[1], [0], [0], [1], [0, 0, 1, 1], [], []>} : vector<16x96xf32>, vector<96x128xf32>, vector<16x128xf32> -> vector<16x128xf32>
    %7 = arith.addf %3, %6 : vector<16x128xf32>
    %c0_6 = arith.constant 0 : index
    %c0_7 = arith.constant 0 : index
    %8 = vector.load %arg8[%c0_6, %c0_7] : memref<16x128xf32, #tpu.memory_space<vmem>>, vector<16x128xf32>
    tpu.vector_store %arg8[%c0_6, %c0_7], %7 {strides = array<i32>} : memref<16x128xf32, #tpu.memory_space<vmem>>, vector<16x128xf32>,
    %c0_i32_8 = arith.constant 0 : i32
    %9 = arith.cmpi eq, %arg2, %c0_i32_8 : i32
    %10 = arith.extui %9 : i1 to i32
    %c0_i32_9 = arith.constant 0 : i32
    %11 = arith.cmpi ne, %10, %c0_i32_9 : i32
    scf.if %11 {
      %c0_10 = arith.constant 0 : index
      %12 = memref.load %arg3[%c0_10] : memref<1xf32, #tpu.memory_space<smem>>
      %c0_11 = arith.constant 0 : index
      %c0_12 = arith.constant 0 : index
      %13 = vector.load %arg8[%c0_11, %c0_12] : memref<16x128xf32, #tpu.memory_space<vmem>>, vector<16x128xf32>
      %14 = vector.broadcast %12 : f32 to vector<16x128xf32>
      %15 = arith.mulf %13, %14 : vector<16x128xf32>
      %c0_13 = arith.constant 0 : index
      %c0_14 = arith.constant 0 : index
      %16 = vector.load %arg6[%c0_13, %c0_14] : memref<1x128xf32, #tpu.memory_space<vmem>>, vector<1x128xf32>
      %17 = vector.broadcast %16 : vector<1x128xf32> to vector<16x128xf32>
      %18 = arith.addf %15, %17 : vector<16x128xf32>
      %c0_15 = arith.constant 0 : index
      %c0_16 = arith.constant 0 : index
      %19 = vector.load %arg7[%c0_15, %c0_16] : memref<16x128xf32, #tpu.memory_space<vmem>>, vector<16x128xf32>
      tpu.vector_store %arg7[%c0_15, %c0_16], %18 {strides = array<i32>} : memref<16x128xf32, #tpu.memory_space<vmem>>, vector<16x128xf32>,
    } else {
    }
    return
  }
  func.func @transform_0(%arg0: i32, %arg1: i32, %arg2: i32, %arg3: memref<1xf32, #tpu.memory_space<smem>>) -> (i32, i32) {
    %c0_i32 = arith.constant 0 : i32
    return %arg1, %arg2 : i32, i32
  }
  func.func @transform_1(%arg0: i32, %arg1: i32, %arg2: i32, %arg3: memref<1xf32, #tpu.memory_space<smem>>) -> (i32, i32) {
    %c0_i32 = arith.constant 0 : i32
    return %arg2, %arg0 : i32, i32
  }
  func.func @transform_2(%arg0: i32, %arg1: i32, %arg2: i32, %arg3: memref<1xf32, #tpu.memory_space<smem>>) -> (i32, i32) {
    %c0_i32 = arith.constant 0 : i32
    %c0_i32_0 = arith.constant 0 : i32
    return %c0_i32, %arg0 : i32, i32
  }
  func.func @transform_3(%arg0: i32, %arg1: i32, %arg2: i32, %arg3: memref<1xf32, #tpu.memory_space<smem>>) -> (i32, i32) {
    %c0_i32 = arith.constant 0 : i32
    return %arg1, %arg0 : i32, i32
  }
}

</mosaic_0001>

<bundles_post_ra>
// kernel: tpu_custom_call.1
= control target key start
LH: loop header
LB: loop body
LE: loop exit
PB: predicated region body
PF: predicated region fallthrough
CT: control target
= control target key end

     0   :  { %10 = vsyncpa [#allocation6], 0  ;;  %s419_s0 = inlined_call_operand.<no memory space> [shape: f32[1], index: 0, kind: input, shape index: {}]   ;;  %s420_s1 = inlined_call_operand.hbm [shape: f32[16,96], index: 1, kind: input, shape index: {}]   ;;  %s421_s2 = inlined_call_operand.hbm [shape: f32[96,128], index: 2, kind: input, shape index: {}]   ;;  %s422_s3 = inlined_call_operand.vmem [shape: f32[1,128], index: 3, kind: input, shape index: {}]   ;;  %s423_s4 = inlined_call_operand.hbm [shape: f32[16,128], index: 4, kind: output, shape index: {}]  }
   0x1   :  { %11 = vsyncpa [#allocation9], 0 }
   0x2   :  { %12 = vsyncpa [#allocation7], 0  ;;  %s336_s15 = smov [#allocation5]   ;;  %s264_s19 = scalar_lea.hbm %s420_s1, 256 }
   0x3   :  { %s18_s16 = sshll.u32 %s336_s15, 4  ;;  %p265_p0 = scmp.ne.s32.totalorder %s420_s1, %s264_s19  ;;  %s19_s16 = int_to_ptr.vmem [resolvable:$true] %s18_s16 }
   0x4   :  { %p268_p1 = scmp.lt.u32.totalorder %s264_s19, %s420_s1 }
   0x6   :  { %p270_p2 = pnand %p268_p1, %p265_p0 }
   0x8   :  { %273 = shalt.err (!%p270_p2)
}
   0x9   :  { %s274_s24 = scalar_lea.vmem %s19_s16, 256  ;;  %p279_p4 = scmp.lt.s32.totalorder %s19_s16, %s19_s16 }
   0xa   :  { %p275_p3 = scmp.ne.s32.totalorder %s19_s16, %s274_s24  ;;  %p280_p5 = scmp.lt.s32.totalorder %s274_s24, %s274_s24 }
   0xc   :  { %p281_p6 = por %p280_p5, %p279_p4 }
   0xe   :  { %p282_p7 = pnand %p281_p6, %p275_p3 }
  0x10   :  { %285 = shalt.err (!%p282_p7)
}
  0x11   :  { %s337_s25 = smov 128   ;;  %s338_s26 = smov 8  }
  0x12   :  { %24 = dma.hbm_to_vmem [thread:$0]  %s420_s1, 256, %s19_s16, [#allocation6], %s337_s25, %s337_s25, %s338_s26  }
  0x13   :  { %s339_s29 = smov [#allocation8]   ;;  %s286_s7 = scalar_lea.hbm %s421_s2, 1536 }
  0x14   :  { %s30_s30 = sshll.u32 %s339_s29, 4  ;;  %p287_p8 = scmp.ne.s32.totalorder %s421_s2, %s286_s7  ;;  %s31_s30 = int_to_ptr.vmem [resolvable:$true] %s30_s30 }
  0x15   :  { %p290_p9 = scmp.lt.u32.totalorder %s286_s7, %s421_s2 }
  0x17   :  { %p292_p10 = pnand %p290_p9, %p287_p8 }
  0x19   :  { %295 = shalt.err (!%p292_p10)
}
  0x1a   :  { %s296_s12 = scalar_lea.vmem %s31_s30, 1536  ;;  %p301_p12 = scmp.lt.s32.totalorder %s31_s30, %s31_s30 }
  0x1b   :  { %p297_p11 = scmp.ne.s32.totalorder %s31_s30, %s296_s12  ;;  %p302_p13 = scmp.lt.s32.totalorder %s296_s12, %s296_s12 }
  0x1d   :  { %p303_p0 = por %p302_p13, %p301_p12 }
  0x1f   :  { %p304_p1 = pnand %p303_p0, %p297_p11 }
  0x21   :  { %307 = shalt.err (!%p304_p1)
}
  0x22   :  { %36 = dma.hbm_to_vmem [thread:$0]  %s421_s2, 1536, %s31_s30, [#allocation9], %s337_s25, %s337_s25, %s338_s26  }
  0x23   :  { %330 = dma.done.wait [#allocation6], 256  }
  0x24   :  { %331 = vsyncadd [#allocation6], 4294967040 }
  0x25   :  { %332 = dma.done.wait [#allocation9], 1536  }
  0x26   :  { %333 = vsyncadd [#allocation9], 4294965760  ;;  %v55_v0 = vld [vmem:[#allocation8] sm:$0xff]  ;;  %v56_v1 = vld [vmem:[#allocation8 + $0x8] sm:$0xff]  ;;  %vm67_vm0 = vcmask 785408   ;;  %v159_v20 = vstv %s419_s0  ;;  %s340_s17 = smov [#allocation10]  }
  0x27   :  { %v57_v2 = vld [vmem:[#allocation8 + $0x10] sm:$0xff]  ;;  %v235_v3 = vpack.c.bf16 %v56_v1, %v55_v0  ;;  %v58_v4 = vld [vmem:[#allocation8 + $0x18] sm:$0xff]  ;;  %v59_v6 = vld [vmem:[#allocation8 + $0x20] sm:$0xff]  ;;  %s178_s18 = sshll.u32 %s340_s17, 4  ;;  %s179_s18 = int_to_ptr.vmem [resolvable:$true] %s178_s18 }
  0x28   :  { %v239_v5 = vpack.c.bf16 %v58_v4, %v57_v2  ;;  %v60_v7 = vld [vmem:[#allocation8 + $0x28] sm:$0xff]  ;;  %v53_v8 = vld [vmem:[#allocation5] sm:$0xff]  ;;  %v62_v11 = vld [vmem:[#allocation8 + $0x38] sm:$0xff]  ;;  %s308_s19 = scalar_lea.vmem %s179_s18, 256  ;;  %p313_p3 = scmp.lt.s32.totalorder %s179_s18, %s179_s18 }
  0x29   :  { %236 = vmatprep.subr.bf16.mxu0 %v235_v3  ;;  %v243_v9 = vpack.c.bf16 %v60_v7, %v59_v6  ;;  %232 = vmatprep.mubr.msk.f32.mxu0 %vm67_vm0, %v53_v8  ;;  %v61_v10 = vld [vmem:[#allocation8 + $0x30] sm:$0xff]  ;;  %v63_v13 = vld [vmem:[#allocation8 + $0x40] sm:$0xff]  ;;  %v64_v14 = vld [vmem:[#allocation8 + $0x48] sm:$0xff]  ;;  %p309_p2 = scmp.ne.s32.totalorder %s179_s18, %s308_s19  ;;  %p314_p4 = scmp.lt.s32.totalorder %s308_s19, %s308_s19 }
  0x2a   :  { %238 = vmatpush3.bf16.msra.mxu0 %v235_v3  ;;  %v247_v12 = vpack.c.bf16 %v62_v11, %v61_v10  ;;  %v251_v15 = vpack.c.bf16 %v64_v14, %v63_v13  ;;  %v65_v16 = vld [vmem:[#allocation8 + $0x50] sm:$0xff]  ;;  %v66_v17 = vld [vmem:[#allocation8 + $0x58] sm:$0xff] }
  0x2b   :  { %240 = vmatprep.subr.bf16.mxu0 %v239_v5  ;;  %v255_v18 = vpack.c.bf16 %v66_v17, %v65_v16  ;;  %v54_v19 = vld [vmem:[#allocation5 + $0x8] sm:$0xff]  ;;  %v193_v22 = vld [vmem:[%s422_s3] ss:$0 sm:$0xff]  ;;  %p315_p5 = por %p314_p4, %p313_p3 }
  0x2d   :  { %p316_p6 = pnand %p315_p5, %p309_p2 }
  0x2e   :  { %242 = vmatpush3.bf16.msra.mxu0 %v239_v5 }
  0x2f   :  { %244 = vmatprep.subr.bf16.mxu0 %v243_v9 }
  0x32   :  { %246 = vmatpush3.bf16.msra.mxu0 %v243_v9 }
  0x33   :  { %248 = vmatprep.subr.bf16.mxu0 %v247_v12 }
  0x36   :  { %250 = vmatpush3.bf16.msra.mxu0 %v247_v12 }
  0x37   :  { %252 = vmatprep.subr.bf16.mxu0 %v251_v15 }
  0x3a   :  { %254 = vmatpush3.bf16.msra.mxu0 %v251_v15 }
  0x3b   :  { %256 = vmatprep.subr.bf16.mxu0 %v255_v18 }
  0x3e   :  { %258 = vmatpush3.bf16.msra.mxu0 %v255_v18 }
  0x41   :  { %233 = vmatmul.mubr.msk.f32.vlgmr.msra.gmra.mrb[0].mxu0 %vm67_vm0, %v54_v19 }
 0x114   :  { %v234_v21 = vpop.f32.mrb[0].mxu0 }
 0x115   :  { %v161_v23 = vmul.f32 %v234_v21, %v159_v20  ;;  %v140_v24 = vpop.f32.mrb[1].mxu0 }
 0x116   :  { %v160_v25 = vmul.f32 %v159_v20, %v140_v24 }
 0x117   :  { %v170_v26 = vadd.f32 %v193_v22, %v161_v23 }
 0x118   :  { %v169_v27 = vadd.f32 %v193_v22, %v160_v25 }
 0x119   :  { %172 = vst [vmem:[#allocation10 + $0x8] sm:$0xff] %v170_v26 }
 0x11a   :  { %171 = vst [vmem:[#allocation10] sm:$0xff] %v169_v27 }
 0x11b   :  { %319 = shalt.err (!%p316_p6)
}
 0x11c   :  { %s320_s3 = scalar_lea.hbm %s423_s4, 256 }
 0x11d   :  { %p321_p7 = scmp.ne.s32.totalorder %s423_s4, %s320_s3  ;;  %p324_p8 = scmp.lt.u32.totalorder %s320_s3, %s423_s4 }
 0x11f   :  { %p326_p9 = pnand %p324_p8, %p321_p7 }
 0x121   :  { %329 = shalt.err (!%p326_p9)
}
 0x122   :  { %184 = dma.vmem_to_hbm [thread:$0]  %s179_s18, 256, %s423_s4, [#allocation7], %s337_s25, %s337_s25, %s338_s26  }
 0x123   :  { %334 = dma.done.wait [#allocation7], 256  }
 0x124   :  { %335 = vsyncadd [#allocation7], 4294967040 }
 0x125   :  { %188 = vsyncpa [#allocation6], 1 }
 0x126   :  { %189 = vsyncpa [#allocation9], 1 }
 0x127   :  { %190 = vsyncpa [#allocation7], 1 }

</bundles_post_ra>
